<compile_context>
chip_gen: v7x
topology: tpu7x:2x2x1
jax: 0.10.0
libtpu: 0.0.40
codegen_flags: <defaults>
</compile_context>

<pallas_src>
import functools

import jax
import jax.numpy as jnp
from jax.experimental import pallas as pl
from jax.experimental.pallas import tpu as pltpu

D_IN = 784        # 28 * 28 (binarized MNIST)
D_HID = 300
D_HID_PAD = 384   # 300 rounded up to a multiple of 128 (lane-aligned)
D_OUT = 1
TB_MAX = 1024     # batch tile rows (multiple of 8; VMEM-safe on v5e/v6e/v7x)


def _mlp_kernel(x_ref, w1_ref, b1_ref, w2row_ref, b2_ref, o_ref):
    # x_ref    : (TB, 784)        bf16   (batch tile)
    # w1_ref   : (784, 384)       bf16   (resident, zero-padded hidden cols)
    # b1_ref   : (1, 384)         f32
    # w2row_ref: (1, 384)         f32    (fc2 weight as a row, zero-padded)
    # b2_ref   : (1, 1)           f32
    # o_ref    : (TB, 1)          f32
    h = jnp.dot(x_ref[...], w1_ref[...],
                preferred_element_type=jnp.float32) + b1_ref[...]
    h = jnp.maximum(h, 0.0)                                   # ReLU on VPU
    # fc2 (hidden -> 1) as VPU multiply + XLU lane reduction instead of an
    # N=1 MXU matmul (which would waste 255/256 MXU columns).
    y = jnp.sum(h * w2row_ref[...], axis=-1, keepdims=True) + b2_ref[...]
    o_ref[...] = y.astype(o_ref.dtype)


def prepare_params(w1, b1, w2, b2):
    """One-time weight prep (transpose / pad / cast) done OUTSIDE the hot path.

    Accepts PyTorch-layout params: w1 (d_hid, 784), b1 (d_hid,),
    w2 (1, d_hid), b2 (1,).  Returns kernel-ready arrays.
    """
    d_hid = w1.shape[0]
    pad = D_HID_PAD - d_hid
    assert pad >= 0

    w1t = jnp.asarray(w1, jnp.float32).T                          # (784, d_hid)
    w1t = jnp.pad(w1t, ((0, 0), (0, pad))).astype(jnp.bfloat16)   # (784, 384)

    b1p = jnp.pad(jnp.asarray(b1, jnp.float32), (0, pad))         # (384,)
    b1p = b1p.reshape(1, D_HID_PAD)

    w2row = jnp.pad(jnp.asarray(w2, jnp.float32).reshape(1, d_hid),
                    ((0, 0), (0, pad)))                           # (1, 384)

    b2r = jnp.asarray(b2, jnp.float32).reshape(1, D_OUT)          # (1, 1)
    return w1t, b1p, w2row, b2r


@functools.partial(jax.jit, static_argnames=("tb_max",))
def binarized_mnist_net(x, w1t, b1p, w2row, b2r, tb_max=TB_MAX):
    """Forward pass.  x: (B, 1, 28, 28) or (B, 784) -> (B,) float32."""
    B = x.shape[0]
    x2 = x.reshape(B, -1).astype(jnp.bfloat16)        # torch.flatten(x, 1)
    assert x2.shape[1] == D_IN

    # Pad batch to a multiple of the tile so every hot tile is full / unmasked.
    b_pad = ((B + 7) // 8) * 8                        # sublane-align
    tb = min(tb_max, b_pad)                           # tile rows (multiple of 8)
    b_pad = ((b_pad + tb - 1) // tb) * tb             # multiple of tb
    if b_pad != B:
        x2 = jnp.pad(x2, ((0, b_pad - B), (0, 0)))

    grid = (b_pad // tb,)

    out2d = pl.pallas_call(
        _mlp_kernel,
        out_shape=jax.ShapeDtypeStruct((b_pad, D_OUT), jnp.float32),
        grid=grid,
        in_specs=[
            pl.BlockSpec((tb, D_IN), lambda i: (i, 0)),          # x: tiled
            pl.BlockSpec((D_IN, D_HID_PAD), lambda i: (0, 0)),   # W1: resident
            pl.BlockSpec((1, D_HID_PAD), lambda i: (0, 0)),      # b1: resident
            pl.BlockSpec((1, D_HID_PAD), lambda i: (0, 0)),      # w2 row: resident
            pl.BlockSpec((1, D_OUT), lambda i: (0, 0)),          # b2: resident
        ],
        out_specs=pl.BlockSpec((tb, D_OUT), lambda i: (i, 0)),
        compiler_params=pltpu.CompilerParams(
            dimension_semantics=("parallel",),
        ),
    )(x2, w1t, b1p, w2row, b2r)

    return out2d[:B, 0]                               # x.flatten() -> (B,)


def init_params(key, d_hid=D_HID):
    """Deterministic init mirroring nn.Linear's U(-1/sqrt(fan_in), 1/sqrt(fan_in))."""
    k1, k2, k3, k4 = jax.random.split(key, 4)
    lim1 = 1.0 / jnp.sqrt(jnp.float32(D_IN))
    lim2 = 1.0 / jnp.sqrt(jnp.float32(d_hid))
    w1 = jax.random.uniform(k1, (d_hid, D_IN), jnp.float32, -lim1, lim1)   # (out, in)
    b1 = jax.random.uniform(k2, (d_hid,), jnp.float32, -lim1, lim1)
    w2 = jax.random.uniform(k3, (D_OUT, d_hid), jnp.float32, -lim2, lim2)  # (out, in)
    b2 = jax.random.uniform(k4, (D_OUT,), jnp.float32, -lim2, lim2)
    return w1, b1, w2, b2


if __name__ == "__main__":
    key = jax.random.PRNGKey(0)
    k_params, k_x = jax.random.split(key)

    w1, b1, w2, b2 = init_params(k_params)
    params = prepare_params(w1, b1, w2, b2)           # one-time prep

    B = 2
    # Binarized MNIST-like input, NCHW as PyTorch expects.
    x = (jax.random.uniform(k_x, (B, 1, 28, 28), jnp.float32) > 0.5).astype(jnp.float32)

    out = binarized_mnist_net(x, *params)
    out = jax.block_until_ready(out)

    # Pure-JAX reference of the same math (bf16 inputs / f32 accumulation,
    # matching the kernel's precision choices).
    xf = x.reshape(B, -1).astype(jnp.bfloat16)
    w1tb = w1.T.astype(jnp.bfloat16)
    h_ref = jnp.maximum(
        jnp.dot(xf, w1tb, preferred_element_type=jnp.float32) + b1, 0.0)
    ref = (h_ref @ w2.T + b2).reshape(-1)

    # Loose f32 reference sanity check too (bf16 cast error is << 1e-2 here).
    h_f32 = jnp.maximum(x.reshape(B, -1) @ w1.T + b1, 0.0)
    ref_f32 = (h_f32 @ w2.T + b2).reshape(-1)

    assert out.shape == (B,)
    assert jnp.allclose(out, ref, atol=1e-3, rtol=1e-3), (out, ref)
    assert jnp.allclose(out, ref_f32, atol=3e-2, rtol=3e-2), (out, ref_f32)

    print("KERNEL_OK")
</pallas_src>

<mosaic_0001>
module attributes {stable_mosaic.version = 11 : i64} {
  func.func @_mlp_kernel(%arg0: i32, %arg1: memref<8x784xbf16, #tpu.memory_space<vmem>>, %arg2: memref<784x384xbf16, #tpu.memory_space<vmem>>, %arg3: memref<1x384xf32, #tpu.memory_space<vmem>>, %arg4: memref<1x384xf32, #tpu.memory_space<vmem>>, %arg5: memref<1x1xf32, #tpu.memory_space<vmem>>, %arg6: memref<8x1xf32, #tpu.memory_space<vmem>>) attributes {dimension_semantics = [#tpu.dimension_semantics<parallel>], iteration_bounds = array<i64: 1>, scalar_prefetch = 0 : i64, scratch_operands = 0 : i64, tpu.core_type = #tpu.core_type<tc>, window_params = [{transform_indices = @transform_0, window_bounds = array<i64: 8, 784>}, {pipeline_mode = #tpu.pipeline_mode<synchronous>, transform_indices = @transform_1, window_bounds = array<i64: 784, 384>}, {pipeline_mode = #tpu.pipeline_mode<synchronous>, transform_indices = @transform_2, window_bounds = array<i64: 1, 384>}, {pipeline_mode = #tpu.pipeline_mode<synchronous>, transform_indices = @transform_3, window_bounds = array<i64: 1, 384>}, {pipeline_mode = #tpu.pipeline_mode<synchronous>, transform_indices = @transform_4, window_bounds = array<i64: 1, 1>}, {transform_indices = @transform_5, window_bounds = array<i64: 8, 1>}]} {
    %c0 = arith.constant 0 : index
    %c0_0 = arith.constant 0 : index
    %0 = vector.load %arg1[%c0, %c0_0] : memref<8x784xbf16, #tpu.memory_space<vmem>>, vector<8x784xbf16>
    %c0_1 = arith.constant 0 : index
    %c0_2 = arith.constant 0 : index
    %1 = vector.load %arg2[%c0_1, %c0_2] : memref<784x384xbf16, #tpu.memory_space<vmem>>, vector<784x384xbf16>
    %cst = arith.constant dense<0.000000e+00> : vector<8x384xf32>
    %2 = tpu.matmul %0, %1, %cst {dimension_numbers = #tpu.dot_dimension_numbers<[1], [0], [0], [1], [0, 0, 1, 1], [], []>} : vector<8x784xbf16>, vector<784x384xbf16>, vector<8x384xf32> -> vector<8x384xf32>
    %c0_3 = arith.constant 0 : index
    %c0_4 = arith.constant 0 : index
    %3 = vector.load %arg3[%c0_3, %c0_4] : memref<1x384xf32, #tpu.memory_space<vmem>>, vector<1x384xf32>
    %4 = vector.broadcast %3 : vector<1x384xf32> to vector<8x384xf32>
    %5 = arith.addf %2, %4 : vector<8x384xf32>
    %cst_5 = arith.constant 0.000000e+00 : f32
    %6 = vector.broadcast %cst_5 : f32 to vector<8x384xf32>
    %7 = arith.maximumf %5, %6 : vector<8x384xf32>
    %c0_6 = arith.constant 0 : index
    %c0_7 = arith.constant 0 : index
    %8 = vector.load %arg4[%c0_6, %c0_7] : memref<1x384xf32, #tpu.memory_space<vmem>>, vector<1x384xf32>
    %9 = vector.broadcast %8 : vector<1x384xf32> to vector<8x384xf32>
    %10 = arith.mulf %7, %9 : vector<8x384xf32>
    %cst_8 = arith.constant dense<0.000000e+00> : vector<8xf32>
    %11 = vector.multi_reduction <add>, %10, %cst_8 [1] : vector<8x384xf32> to vector<8xf32>
    %12 = vector.shape_cast %11 : vector<8xf32> to vector<8x1xf32>
    %c0_9 = arith.constant 0 : index
    %c0_10 = arith.constant 0 : index
    %13 = vector.load %arg5[%c0_9, %c0_10] : memref<1x1xf32, #tpu.memory_space<vmem>>, vector<1x1xf32>
    %14 = vector.broadcast %13 : vector<1x1xf32> to vector<8x1xf32>
    %15 = arith.addf %12, %14 : vector<8x1xf32>
    %c0_11 = arith.constant 0 : index
    %c0_12 = arith.constant 0 : index
    %16 = vector.load %arg6[%c0_11, %c0_12] : memref<8x1xf32, #tpu.memory_space<vmem>>, vector<8x1xf32>
    tpu.vector_store %arg6[%c0_11, %c0_12], %15 {strides = array<i32>} : memref<8x1xf32, #tpu.memory_space<vmem>>, vector<8x1xf32>,
    return
  }
  func.func @transform_0(%arg0: i32) -> (i32, i32) {
    %c0_i32 = arith.constant 0 : i32
    %c0_i32_0 = arith.constant 0 : i32
    return %arg0, %c0_i32 : i32, i32
  }
  func.func @transform_1(%arg0: i32) -> (i32, i32) {
    %c0_i32 = arith.constant 0 : i32
    %c0_i32_0 = arith.constant 0 : i32
    %c0_i32_1 = arith.constant 0 : i32
    return %c0_i32, %c0_i32_0 : i32, i32
  }
  func.func @transform_2(%arg0: i32) -> (i32, i32) {
    %c0_i32 = arith.constant 0 : i32
    %c0_i32_0 = arith.constant 0 : i32
    %c0_i32_1 = arith.constant 0 : i32
    return %c0_i32, %c0_i32_0 : i32, i32
  }
  func.func @transform_3(%arg0: i32) -> (i32, i32) {
    %c0_i32 = arith.constant 0 : i32
    %c0_i32_0 = arith.constant 0 : i32
    %c0_i32_1 = arith.constant 0 : i32
    return %c0_i32, %c0_i32_0 : i32, i32
  }
  func.func @transform_4(%arg0: i32) -> (i32, i32) {
    %c0_i32 = arith.constant 0 : i32
    %c0_i32_0 = arith.constant 0 : i32
    %c0_i32_1 = arith.constant 0 : i32
    return %c0_i32, %c0_i32_0 : i32, i32
  }
  func.func @transform_5(%arg0: i32) -> (i32, i32) {
    %c0_i32 = arith.constant 0 : i32
    %c0_i32_0 = arith.constant 0 : i32
    return %arg0, %c0_i32 : i32, i32
  }
}

</mosaic_0001>

<bundles_post_ra>
// kernel: binarized_mnist_net.1
= control target key start
LH: loop header
LB: loop body
LE: loop exit
PB: predicated region body
PF: predicated region fallthrough
CT: control target
= control target key end

     0   :  { %s2008_s0 = inlined_call_operand.vmem [shape: bf16[8,784], index: 0, kind: input, shape index: {}]   ;;  %s2009_s1 = inlined_call_operand.hbm [shape: bf16[784,384], index: 1, kind: input, shape index: {}]   ;;  %s2010_s2 = inlined_call_operand.vmem [shape: f32[1,384], index: 2, kind: input, shape index: {}]   ;;  %s2011_s3 = inlined_call_operand.vmem [shape: f32[1,384], index: 3, kind: input, shape index: {}]   ;;  %s2012_s4 = inlined_call_operand.<no memory space> [shape: f32[1,1], index: 4, kind: input, shape index: {}]   ;;  %s2013_s5 = inlined_call_operand.vmem [shape: f32[8,1], index: 5, kind: output, shape index: {}]  }
   0x1   :  { %v10_v0 = vstv %s2012_s4 }
   0x2   :  { %11 = vst [vmem:[#allocation2] sm:$0x1] %v10_v0 }
   0x3   :  { %12 = vsyncpa [#allocation4], 0  ;;  %s1908_s20 = smov [#allocation3]   ;;  %s1884_s24 = scalar_lea.hbm %s2009_s1, 18816 }
   0x4   :  { %s20_s21 = sshll.u32 %s1908_s20, 4  ;;  %p1885_p0 = scmp.ne.s32.totalorder %s2009_s1, %s1884_s24  ;;  %s21_s21 = int_to_ptr.vmem [resolvable:$true] %s20_s21 }
   0x5   :  { %p1888_p1 = scmp.lt.u32.totalorder %s1884_s24, %s2009_s1 }
   0x7   :  { %p1890_p2 = pnand %p1888_p1, %p1885_p0 }
   0x9   :  { %1893 = shalt.err (!%p1890_p2)
}
   0xa   :  { %s1894_s4 = scalar_lea.vmem %s21_s21, 18816  ;;  %p1899_p4 = scmp.lt.s32.totalorder %s21_s21, %s21_s21 }
   0xb   :  { %p1895_p3 = scmp.ne.s32.totalorder %s21_s21, %s1894_s4  ;;  %p1900_p5 = scmp.lt.s32.totalorder %s1894_s4, %s1894_s4 }
   0xd   :  { %p1901_p6 = por %p1900_p5, %p1899_p4 }
   0xf   :  { %p1902_p7 = pnand %p1901_p6, %p1895_p3 }
  0x11   :  { %1905 = shalt.err (!%p1902_p7)
}
  0x12   :  { %s1909_s29 = smov 192   ;;  %s1910_s30 = smov 12  }
  0x13   :  { %26 = dma.hbm_to_vmem [thread:$0]  %s2009_s1, 18816, %s21_s21, [#allocation4], %s1909_s29, %s1909_s29, %s1910_s30  }
  0x14   :  { %1906 = dma.done.wait [#allocation4], 18816  }
  0x15   :  { %1907 = vsyncadd [#allocation4], 4294948480  ;;  %v1681_v1 = vld [vmem:[#allocation3 + $0x4] ss:$12 sps:$4 sm:$0xff]   ;;  %v1685_v3 = vld [vmem:[#allocation3] ss:$12 sps:$4 sm:$0xff]  }
  0x16   :  { %v1683_v2 = vld [vmem:[#allocation3 + $0x184] ss:$12 sps:$4 sm:$0xff]   ;;  %1066 = vmatprep.subr.bf16.mxu1 %v1681_v1  ;;  %v1686_v4 = vld [vmem:[#allocation3 + $0x180] ss:$12 sps:$4 sm:$0xff]   ;;  %v1687_v5 = vld [vmem:[#allocation3 + $0x1c] ss:$12 sps:$4 sm:$0xff]  }
  0x17   :  { %1107 = vmatprep.subr.bf16.mxu0 %v1683_v2  ;;  %1067 = vmatpush1.bf16.msra.mxu1 %v1685_v3  ;;  %v1689_v6 = vld [vmem:[#allocation3 + $0x19c] ss:$12 sps:$4 sm:$0xff]   ;;  %v1691_v7 = vld [vmem:[#allocation3 + $0x18] ss:$12 sps:$4 sm:$0xff]   ;;  %v1693_v9 = vld [vmem:[#allocation3 + $0x34] ss:$12 sps:$4 sm:$0xff]  }
  0x18   :  { %1108 = vmatpush1.bf16.msra.mxu0 %v1686_v4  ;;  %1068 = vmatprep.subr.bf16.mxu1 %v1687_v5  ;;  %v1692_v8 = vld [vmem:[#allocation3 + $0x198] ss:$12 sps:$4 sm:$0xff]   ;;  %v1695_v10 = vld [vmem:[#allocation3 + $0x1b4] ss:$12 sps:$4 sm:$0xff]   ;;  %v1697_v11 = vld [vmem:[#allocation3 + $0x30] ss:$12 sps:$4 sm:$0xff]  }
  0x19   :  { %1109 = vmatprep.subr.bf16.mxu0 %v1689_v6  ;;  %v1698_v12 = vld [vmem:[#allocation3 + $0x1b0] ss:$12 sps:$4 sm:$0xff]   ;;  %v1699_v13 = vld [vmem:[#allocation3 + $0x4c] ss:$12 sps:$4 sm:$0xff]   ;;  %v1703_v15 = vld [vmem:[#allocation3 + $0x48] ss:$12 sps:$4 sm:$0xff]  }
  0x1a   :  { %v1701_v14 = vld [vmem:[#allocation3 + $0x1cc] ss:$12 sps:$4 sm:$0xff]   ;;  %v1704_v16 = vld [vmem:[#allocation3 + $0x1c8] ss:$12 sps:$4 sm:$0xff]   ;;  %v1705_v17 = vld [vmem:[#allocation3 + $0x64] ss:$12 sps:$4 sm:$0xff]  }
  0x1b   :  { %1069 = vmatpush1.bf16.msra.mxu1 %v1691_v7  ;;  %v1707_v18 = vld [vmem:[#allocation3 + $0x1e4] ss:$12 sps:$4 sm:$0xff]   ;;  %v1709_v19 = vld [vmem:[#allocation3 + $0x60] ss:$12 sps:$4 sm:$0xff]   ;;  %v1711_v21 = vld [vmem:[#allocation3 + $0x7c] ss:$12 sps:$4 sm:$0xff]  }
  0x1c   :  { %1110 = vmatpush1.bf16.msra.mxu0 %v1692_v8  ;;  %1070 = vmatprep.subr.bf16.mxu1 %v1693_v9  ;;  %v1710_v20 = vld [vmem:[#allocation3 + $0x1e0] ss:$12 sps:$4 sm:$0xff]   ;;  %v1713_v22 = vld [vmem:[#allocation3 + $0x1fc] ss:$12 sps:$4 sm:$0xff]   ;;  %v1715_v23 = vld [vmem:[#allocation3 + $0x78] ss:$12 sps:$4 sm:$0xff]  }
  0x1d   :  { %1111 = vmatprep.subr.bf16.mxu0 %v1695_v10  ;;  %v1716_v24 = vld [vmem:[#allocation3 + $0x1f8] ss:$12 sps:$4 sm:$0xff]   ;;  %v1717_v25 = vld [vmem:[#allocation3 + $0x94] ss:$12 sps:$4 sm:$0xff]   ;;  %v1721_v27 = vld [vmem:[#allocation3 + $0x90] ss:$12 sps:$4 sm:$0xff]  }
  0x1e   :  { %v1719_v26 = vld [vmem:[#allocation3 + $0x214] ss:$12 sps:$4 sm:$0xff]   ;;  %v1722_v28 = vld [vmem:[#allocation3 + $0x210] ss:$12 sps:$4 sm:$0xff]   ;;  %v1723_v29 = vld [vmem:[#allocation3 + $0xac] ss:$12 sps:$4 sm:$0xff]  }
  0x1f   :  { %1071 = vmatpush1.bf16.msra.mxu1 %v1697_v11  ;;  %v1725_v30 = vld [vmem:[#allocation3 + $0x22c] ss:$12 sps:$4 sm:$0xff]   ;;  %v1727_v31 = vld [vmem:[#allocation3 + $0xa8] ss:$12 sps:$4 sm:$0xff]   ;;  %v1729_v33 = vld [vmem:[#allocation3 + $0xc4] ss:$12 sps:$4 sm:$0xff]  }
  0x20   :  { %1112 = vmatpush1.bf16.msra.mxu0 %v1698_v12  ;;  %1072 = vmatprep.subr.bf16.mxu1 %v1699_v13  ;;  %v1728_v32 = vld [vmem:[#allocation3 + $0x228] ss:$12 sps:$4 sm:$0xff]   ;;  %v1731_v34 = vld [vmem:[#allocation3 + $0x244] ss:$12 sps:$4 sm:$0xff]   ;;  %v1733_v35 = vld [vmem:[#allocation3 + $0xc0] ss:$12 sps:$4 sm:$0xff]  }
  0x21   :  { %1113 = vmatprep.subr.bf16.mxu0 %v1701_v14  ;;  %v1734_v36 = vld [vmem:[#allocation3 + $0x240] ss:$12 sps:$4 sm:$0xff]   ;;  %v1735_v37 = vld [vmem:[#allocation3 + $0xdc] ss:$12 sps:$4 sm:$0xff]   ;;  %v1739_v39 = vld [vmem:[#allocation3 + $0xd8] ss:$12 sps:$4 sm:$0xff]  }
  0x22   :  { %v1737_v38 = vld [vmem:[#allocation3 + $0x25c] ss:$12 sps:$4 sm:$0xff]   ;;  %v1740_v40 = vld [vmem:[#allocation3 + $0x258] ss:$12 sps:$4 sm:$0xff]   ;;  %v1741_v41 = vld [vmem:[#allocation3 + $0xf4] ss:$12 sps:$4 sm:$0xff]  }
  0x23   :  { %1073 = vmatpush1.bf16.msra.mxu1 %v1703_v15  ;;  %v1743_v42 = vld [vmem:[#allocation3 + $0x274] ss:$12 sps:$4 sm:$0xff]   ;;  %v1745_v43 = vld [vmem:[#allocation3 + $0xf0] ss:$12 sps:$4 sm:$0xff]   ;;  %v1747_v45 = vld [vmem:[#allocation3 + $0x10c] ss:$12 sps:$4 sm:$0xff]  }
  0x24   :  { %1114 = vmatpush1.bf16.msra.mxu0 %v1704_v16  ;;  %1074 = vmatprep.subr.bf16.mxu1 %v1705_v17  ;;  %v1746_v44 = vld [vmem:[#allocation3 + $0x270] ss:$12 sps:$4 sm:$0xff]   ;;  %v1749_v46 = vld [vmem:[#allocation3 + $0x28c] ss:$12 sps:$4 sm:$0xff]   ;;  %v1751_v47 = vld [vmem:[#allocation3 + $0x108] ss:$12 sps:$4 sm:$0xff]  }
  0x25   :  { %1115 = vmatprep.subr.bf16.mxu0 %v1707_v18  ;;  %v37_v48 = vld [vmem:[%s2008_s0] sm:$0xff]  ;;  %v38_v50 = vld [vmem:[%s2008_s0 + $0x8] sm:$0xff]  ;;  %vm1062_vm0 = vcmask 130048   ;;  %vm1913_vm1 = vmmov 0   ;;  %vm1425_vm2 = vcmask 7168  }
  0x26   :  { %v1962_v49 = vcombine.high %v37_v48, %v37_v48  ;;  %v1752_v51 = vld [vmem:[#allocation3 + $0x288] ss:$12 sps:$4 sm:$0xff]   ;;  %v1753_v52 = vld [vmem:[#allocation3 + $0x124] ss:$12 sps:$4 sm:$0xff]   ;;  %v1967_v53 = vcombine.high %v38_v50, %v38_v50  ;;  %v1757_v55 = vld [vmem:[#allocation3 + $0x120] ss:$12 sps:$4 sm:$0xff]   ;;  %v1971_v7 = vcombine.low %v37_v48, %v37_v48  ;;  %v1973_v8 = vcombine.low %v38_v50, %v38_v50 }
  0x27   :  { %1075 = vmatpush1.bf16.msra.mxu1 %v1709_v19  ;;  %v1755_v54 = vld [vmem:[#allocation3 + $0x2a4] ss:$12 sps:$4 sm:$0xff]   ;;  %v1758_v56 = vld [vmem:[#allocation3 + $0x2a0] ss:$12 sps:$4 sm:$0xff]   ;;  %v1759_v57 = vld [vmem:[#allocation3 + $0x13c] ss:$12 sps:$4 sm:$0xff]  }
  0x28   :  { %1116 = vmatpush1.bf16.msra.mxu0 %v1710_v20  ;;  %1076 = vmatprep.subr.bf16.mxu1 %v1711_v21  ;;  %v1761_v58 = vld [vmem:[#allocation3 + $0x2bc] ss:$12 sps:$4 sm:$0xff]   ;;  %v1763_v59 = vld [vmem:[#allocation3 + $0x138] ss:$12 sps:$4 sm:$0xff]   ;;  %v1765_v61 = vld [vmem:[#allocation3 + $0x154] ss:$12 sps:$4 sm:$0xff]  }
  0x29   :  { %1117 = vmatprep.subr.bf16.mxu0 %v1713_v22  ;;  %1098 = vmatprep.mubr.bf16.mxu1 %v1962_v49  ;;  %v1764_v60 = vld [vmem:[#allocation3 + $0x2b8] ss:$12 sps:$4 sm:$0xff]   ;;  %v1767_v62 = vld [vmem:[#allocation3 + $0x2d4] ss:$12 sps:$4 sm:$0xff]   ;;  %v1769_v63 = vld [vmem:[#allocation3 + $0x150] ss:$12 sps:$4 sm:$0xff]  }
  0x2a   :  { %1139 = vmatprep.mubr.bf16.mxu0 %v1967_v53  ;;  %v1770_v0 = vld [vmem:[#allocation3 + $0x2d0] ss:$12 sps:$4 sm:$0xff]   ;;  %v1771_v1 = vld [vmem:[#allocation3 + $0x16c] ss:$12 sps:$4 sm:$0xff]   ;;  %v1775_v3 = vld [vmem:[#allocation3 + $0x168] ss:$12 sps:$4 sm:$0xff]  }
  0x2b   :  { %1077 = vmatpush1.bf16.msra.mxu1 %v1715_v23  ;;  %v1773_v2 = vld [vmem:[#allocation3 + $0x2ec] ss:$12 sps:$4 sm:$0xff]   ;;  %v1776_v4 = vld [vmem:[#allocation3 + $0x2e8] ss:$12 sps:$4 sm:$0xff]   ;;  %v1783_v5 = vld [vmem:[#allocation3 + $0x304] ss:$12 sps:$4 sm:$0xff]  }
  0x2c   :  { %1118 = vmatpush1.bf16.msra.mxu0 %v1716_v24  ;;  %1078 = vmatprep.subr.bf16.mxu1 %v1717_v25  ;;  %v1784_v6 = vld [vmem:[#allocation3 + $0xc8] ss:$12 sps:$4 sm:$0xff]   ;;  %v1781_v9 = vld [vmem:[#allocation3 + $0x300] ss:$12 sps:$4 sm:$0xff]   ;;  %v1786_v13 = vld [vmem:[#allocation3 + $0x318] ss:$12 sps:$4 sm:$0xff]  }
  0x2d   :  { %1119 = vmatprep.subr.bf16.mxu0 %v1719_v26  ;;  %v1785_v10 = vld [vmem:[#allocation3 + $0x8] ss:$12 sps:$4 sm:$0xff]   ;;  %v1789_v12 = vld [vmem:[#allocation3 + $0xe0] ss:$12 sps:$4 sm:$0xff]   ;;  %v1794_v16 = vld [vmem:[#allocation3 + $0xf8] ss:$12 sps:$4 sm:$0xff]  }
  0x2e   :  { %v1788_v11 = vld [vmem:[#allocation3 + $0x31c] ss:$12 sps:$4 sm:$0xff]   ;;  %v1790_v14 = vld [vmem:[#allocation3 + $0x20] ss:$12 sps:$4 sm:$0xff]   ;;  %v1795_v18 = vld [vmem:[#allocation3 + $0x38] ss:$12 sps:$4 sm:$0xff]  }
  0x2f   :  { %1079 = vmatpush1.bf16.msra.mxu1 %v1721_v27  ;;  %v1793_v15 = vld [vmem:[#allocation3 + $0x334] ss:$12 sps:$4 sm:$0xff]   ;;  %v1791_v17 = vld [vmem:[#allocation3 + $0x330] ss:$12 sps:$4 sm:$0xff]   ;;  %v1798_v19 = vld [vmem:[#allocation3 + $0x34c] ss:$12 sps:$4 sm:$0xff]  }
  0x30   :  { %1120 = vmatpush1.bf16.msra.mxu0 %v1722_v28  ;;  %1080 = vmatprep.subr.bf16.mxu1 %v1723_v29  ;;  %v1799_v20 = vld [vmem:[#allocation3 + $0x110] ss:$12 sps:$4 sm:$0xff]   ;;  %v1796_v21 = vld [vmem:[#allocation3 + $0x348] ss:$12 sps:$4 sm:$0xff]   ;;  %v1801_v25 = vld [vmem:[#allocation3 + $0x360] ss:$12 sps:$4 sm:$0xff]  }
  0x31   :  { %1121 = vmatprep.subr.bf16.mxu0 %v1725_v30  ;;  %v1800_v22 = vld [vmem:[#allocation3 + $0x50] ss:$12 sps:$4 sm:$0xff]   ;;  %v1804_v24 = vld [vmem:[#allocation3 + $0x128] ss:$12 sps:$4 sm:$0xff]   ;;  %v1809_v28 = vld [vmem:[#allocation3 + $0x140] ss:$12 sps:$4 sm:$0xff]  }
  0x32   :  { %v1803_v23 = vld [vmem:[#allocation3 + $0x364] ss:$12 sps:$4 sm:$0xff]   ;;  %v1805_v26 = vld [vmem:[#allocation3 + $0x68] ss:$12 sps:$4 sm:$0xff]   ;;  %v1810_v30 = vld [vmem:[#allocation3 + $0x80] ss:$12 sps:$4 sm:$0xff]  }
  0x33   :  { %1081 = vmatpush1.bf16.msra.mxu1 %v1727_v31  ;;  %v1808_v27 = vld [vmem:[#allocation3 + $0x37c] ss:$12 sps:$4 sm:$0xff]   ;;  %v1806_v29 = vld [vmem:[#allocation3 + $0x378] ss:$12 sps:$4 sm:$0xff]   ;;  %v1813_v31 = vld [vmem:[#allocation3 + $0x394] ss:$12 sps:$4 sm:$0xff]  }
  0x34   :  { %1122 = vmatpush1.bf16.msra.mxu0 %v1728_v32  ;;  %1082 = vmatprep.subr.bf16.mxu1 %v1729_v33  ;;  %v1814_v32 = vld [vmem:[#allocation3 + $0x158] ss:$12 sps:$4 sm:$0xff]   ;;  %v1811_v33 = vld [vmem:[#allocation3 + $0x390] ss:$12 sps:$4 sm:$0xff]   ;;  %v1830_v48 = vld [vmem:[#allocation3 + $0x1a0] ss:$12 sps:$4 sm:$0xff]  }
  0x35   :  { %1123 = vmatprep.subr.bf16.mxu0 %v1731_v34  ;;  %v1815_v34 = vld [vmem:[#allocation3 + $0x98] ss:$12 sps:$4 sm:$0xff]  }
  0x36   :  { %v1834_v50 = vld [vmem:[#allocation3 + $0x278] ss:$12 sps:$4 sm:$0xff]  }
  0x37   :  { %1083 = vmatpush1.bf16.msra.mxu1 %v1733_v35  ;;  %v1818_v35 = vld [vmem:[#allocation3 + $0x3ac] ss:$12 sps:$4 sm:$0xff]  }
  0x38   :  { %1124 = vmatpush1.bf16.msra.mxu0 %v1734_v36  ;;  %1084 = vmatprep.subr.bf16.mxu1 %v1735_v37  ;;  %v1819_v36 = vld [vmem:[#allocation3 + $0x170] ss:$12 sps:$4 sm:$0xff]   ;;  %v1816_v37 = vld [vmem:[#allocation3 + $0x3a8] ss:$12 sps:$4 sm:$0xff]  }
  0x39   :  { %1125 = vmatprep.subr.bf16.mxu0 %v1737_v38  ;;  %v1820_v38 = vld [vmem:[#allocation3 + $0xb0] ss:$12 sps:$4 sm:$0xff]  }
  0x3b   :  { %1085 = vmatpush1.bf16.msra.mxu1 %v1739_v39  ;;  %v1823_v39 = vld [vmem:[#allocation3 + $0x3c4] ss:$12 sps:$4 sm:$0xff]  }
  0x3c   :  { %1126 = vmatpush1.bf16.msra.mxu0 %v1740_v40  ;;  %1086 = vmatprep.subr.bf16.mxu1 %v1741_v41  ;;  %v1824_v40 = vld [vmem:[#allocation3 + $0x248] ss:$12 sps:$4 sm:$0xff]   ;;  %v1821_v41 = vld [vmem:[#allocation3 + $0x3c0] ss:$12 sps:$4 sm:$0xff]  }
  0x3d   :  { %1127 = vmatprep.subr.bf16.mxu0 %v1743_v42  ;;  %v1825_v42 = vld [vmem:[#allocation3 + $0x188] ss:$12 sps:$4 sm:$0xff]  }
  0x3f   :  { %1087 = vmatpush1.bf16.msra.mxu1 %v1745_v43  ;;  %v1828_v43 = vld [vmem:[#allocation3 + $0x3dc] ss:$12 sps:$4 sm:$0xff]  }
  0x40   :  { %1128 = vmatpush1.bf16.msra.mxu0 %v1746_v44  ;;  %1088 = vmatprep.subr.bf16.mxu1 %v1747_v45  ;;  %v1981_v44 = vld [vmem:[%s2008_s0 + $0x10] sm:$0xff] }
  0x41   :  { %1129 = vmatprep.subr.bf16.mxu0 %v1749_v46  ;;  %v1829_v45 = vld [vmem:[#allocation3 + $0x260] ss:$12 sps:$4 sm:$0xff]   ;;  %v1985_v46 = vcombine.high %v1981_v44, %v1981_v44 }
  0x43   :  { %1089 = vmatpush1.bf16.msra.mxu1 %v1751_v47  ;;  %v1826_v47 = vld [vmem:[#allocation3 + $0x3d8] ss:$12 sps:$4 sm:$0xff]  }
  0x44   :  { %1130 = vmatpush1.bf16.msra.mxu0 %v1752_v51  ;;  %1090 = vmatprep.subr.bf16.mxu1 %v1753_v52  ;;  %v1831_v51 = vld [vmem:[#allocation3 + $0x3f0] ss:$12 sps:$4 sm:$0xff]   ;;  %v1835_v52 = vld [vmem:[#allocation3 + $0x1b8] ss:$12 sps:$4 sm:$0xff]  }
  0x45   :  { %1131 = vmatprep.subr.bf16.mxu0 %v1755_v54  ;;  %v1838_v54 = vld [vmem:[#allocation3 + $0x40c] ss:$12 sps:$4 sm:$0xff]  }
  0x47   :  { %1091 = vmatpush1.bf16.msra.mxu1 %v1757_v55  ;;  %v1839_v55 = vld [vmem:[#allocation3 + $0x290] ss:$12 sps:$4 sm:$0xff]  }
  0x48   :  { %1132 = vmatpush1.bf16.msra.mxu0 %v1758_v56  ;;  %1092 = vmatprep.subr.bf16.mxu1 %v1759_v57  ;;  %v1836_v56 = vld [vmem:[#allocation3 + $0x408] ss:$12 sps:$4 sm:$0xff]   ;;  %v1840_v57 = vld [vmem:[#allocation3 + $0x1d0] ss:$12 sps:$4 sm:$0xff]  }
  0x49   :  { %1133 = vmatprep.subr.bf16.mxu0 %v1761_v58  ;;  %v1843_v58 = vld [vmem:[#allocation3 + $0x424] ss:$12 sps:$4 sm:$0xff]  }
  0x4b   :  { %1093 = vmatpush1.bf16.msra.mxu1 %v1763_v59  ;;  %v1844_v59 = vld [vmem:[#allocation3 + $0x2a8] ss:$12 sps:$4 sm:$0xff]  }
  0x4c   :  { %1134 = vmatpush1.bf16.msra.mxu0 %v1764_v60  ;;  %1094 = vmatprep.subr.bf16.mxu1 %v1765_v61  ;;  %v1841_v60 = vld [vmem:[#allocation3 + $0x420] ss:$12 sps:$4 sm:$0xff]   ;;  %v1845_v61 = vld [vmem:[#allocation3 + $0x1e8] ss:$12 sps:$4 sm:$0xff]  }
  0x4d   :  { %1135 = vmatprep.subr.bf16.mxu0 %v1767_v62  ;;  %v1849_v62 = vld [vmem:[#allocation3 + $0x2c0] ss:$12 sps:$4 sm:$0xff]  }
  0x4f   :  { %1095 = vmatpush1.bf16.msra.mxu1 %v1769_v63  ;;  %v1846_v63 = vld [vmem:[#allocation3 + $0x438] ss:$12 sps:$4 sm:$0xff]  }
  0x50   :  { %1136 = vmatpush1.bf16.msra.mxu0 %v1770_v0  ;;  %1096 = vmatprep.subr.bf16.mxu1 %v1771_v1  ;;  %v1850_v0 = vld [vmem:[#allocation3 + $0x200] ss:$12 sps:$4 sm:$0xff]  }
  0x51   :  { %1137 = vmatprep.subr.bf16.mxu0 %v1773_v2  ;;  %v1853_v1 = vld [vmem:[#allocation3 + $0x454] ss:$12 sps:$4 sm:$0xff]   ;;  %v1854_v2 = vld [vmem:[#allocation3 + $0x2d8] ss:$12 sps:$4 sm:$0xff]  }
  0x53   :  { %1097 = vmatpush1.bf16.msra.mxu1 %v1775_v3  ;;  %v1851_v3 = vld [vmem:[#allocation3 + $0x450] ss:$12 sps:$4 sm:$0xff]  }
  0x54   :  { %1138 = vmatpush1.bf16.msra.mxu0 %v1776_v4  ;;  %1589 = vmatprep.subr.bf16.mxu1 %v1784_v6  ;;  %v1855_v4 = vld [vmem:[#allocation3 + $0x218] ss:$12 sps:$4 sm:$0xff]   ;;  %v1859_v6 = vld [vmem:[#allocation3 + $0x2f0] ss:$12 sps:$4 sm:$0xff]  }
  0x55   :  { %1148 = vmatprep.subr.bf16.mxu0 %v1783_v5  ;;  %v1858_v5 = vld [vmem:[#allocation3 + $0x46c] ss:$12 sps:$4 sm:$0xff]  }
  0x56   :  { %1099 = vmatmul.mubr.bf16.vlgmr.msra.gmra.mrb[0].mxu1 %v1971_v7 }
  0x57   :  { %1140 = vmatmul.mubr.bf16.vlgmr.msra.gmra.mrb[0].mxu0 %v1973_v8  ;;  %1590 = vmatpush3.bf16.msra.mxu1 %v1785_v10  ;;  %v1863_v10 = vld [vmem:[#allocation3 + $0x3c8] ss:$12 sps:$4 sm:$0xff]  }
  0x58   :  { %1149 = vmatpush1.bf16.msra.mxu0 %v1781_v9  ;;  %1591 = vmatprep.subr.bf16.mxu1 %v1789_v12  ;;  %v1860_v9 = vld [vmem:[#allocation3 + $0x230] ss:$12 sps:$4 sm:$0xff]   ;;  %v1436_v12 = vcombine.low %v1981_v44, %v1981_v44 }
  0x59   :  { %1150 = vmatprep.subr.bf16.mxu0 %v1788_v11  ;;  %1262 = vmatprep.mubr.bf16.mxu1 %v1962_v49  ;;  %v1833_v49 = vld [vmem:[#allocation3 + $0x3f4] ss:$12 sps:$4 sm:$0xff]   ;;  %v1869_v11 = vld [vmem:[#allocation3 + $0x484] ss:$12 sps:$4 sm:$0xff]  }
  0x5a   :  { %1180 = vmatprep.mubr.bf16.mxu0 %v1985_v46  ;;  %v237_v44 = vld [vmem:[%s2010_s2] sm:$0x7] }
  0x5b   :  { %1592 = vmatpush3.bf16.msra.mxu1 %v1790_v14  ;;  %v1867_v14 = vld [vmem:[#allocation3 + $0x480] ss:$12 sps:$4 sm:$0xff]  }
  0x5c   :  { %1151 = vmatpush1.bf16.msra.mxu0 %v1786_v13  ;;  %1593 = vmatprep.subr.bf16.mxu1 %v1794_v16  ;;  %v1864_v13 = vld [vmem:[#allocation3 + $0x308] ss:$12 sps:$4 sm:$0xff]   ;;  %v1866_v16 = vld [vmem:[#allocation3 + $0x320] ss:$12 sps:$4 sm:$0xff]  }
  0x5d   :  { %1152 = vmatprep.subr.bf16.mxu0 %v1793_v15  ;;  %v1865_v15 = vld [vmem:[#allocation3 + $0x3e0] ss:$12 sps:$4 sm:$0xff]  }
  0x5f   :  { %1594 = vmatpush3.bf16.msra.mxu1 %v1795_v18  ;;  %v1911_v18 = vmov 0  }
  0x60   :  { %1153 = vmatpush1.bf16.msra.mxu0 %v1791_v17  ;;  %1595 = vmatprep.subr.bf16.mxu1 %v1799_v20  ;;  %v1870_v17 = vld [vmem:[#allocation3 + $0x3f8] ss:$12 sps:$4 sm:$0xff]  }
  0x61   :  { %1154 = vmatprep.subr.bf16.mxu0 %v1798_v19  ;;  %v1912_v19 = vmov 0.0   ;;  %v1871_v20 = vld [vmem:[#allocation3 + $0x338] ss:$12 sps:$4 sm:$0xff]  }
  0x63   :  { %1596 = vmatpush3.bf16.msra.mxu1 %v1800_v22  ;;  %v1872_v22 = vld [vmem:[%s2008_s0 + $0x18] ss:$0 sps:$4 sm:$0xff]  }
  0x64   :  { %1155 = vmatpush1.bf16.msra.mxu0 %v1796_v21  ;;  %1597 = vmatprep.subr.bf16.mxu1 %v1804_v24  ;;  %v1873_v21 = vld [vmem:[#allocation3 + $0x410] ss:$12 sps:$4 sm:$0xff]   ;;  %v1875_v24 = vld [vmem:[#allocation3 + $0x428] ss:$12 sps:$4 sm:$0xff]  }
  0x65   :  { %1156 = vmatprep.subr.bf16.mxu0 %v1803_v23  ;;  %v1883_v23 = vld [vmem:[#allocation3 + $0x488] ss:$12 sps:$4 sm:$0xff]  }
  0x67   :  { %1598 = vmatpush3.bf16.msra.mxu1 %v1805_v26  ;;  %v1877_v26 = vld [vmem:[#allocation3 + $0x440] ss:$12 sps:$4 sm:$0xff]  }
  0x68   :  { %1157 = vmatpush1.bf16.msra.mxu0 %v1801_v25  ;;  %1599 = vmatprep.subr.bf16.mxu1 %v1809_v28  ;;  %v1876_v25 = vld [vmem:[#allocation3 + $0x368] ss:$12 sps:$4 sm:$0xff]   ;;  %v1879_v28 = vld [vmem:[#allocation3 + $0x458] ss:$12 sps:$4 sm:$0xff]  }
  0x69   :  { %1158 = vmatprep.subr.bf16.mxu0 %v1808_v27  ;;  %v1878_v27 = vld [vmem:[#allocation3 + $0x380] ss:$12 sps:$4 sm:$0xff]  }
  0x6b   :  { %1600 = vmatpush3.bf16.msra.mxu1 %v1810_v30  ;;  %v1881_v30 = vld [vmem:[#allocation3 + $0x470] ss:$12 sps:$4 sm:$0xff]  }
  0x6c   :  { %1159 = vmatpush1.bf16.msra.mxu0 %v1806_v29  ;;  %1601 = vmatprep.subr.bf16.mxu1 %v1814_v32  ;;  %v1880_v29 = vld [vmem:[#allocation3 + $0x398] ss:$12 sps:$4 sm:$0xff]  }
  0x6d   :  { %1160 = vmatprep.subr.bf16.mxu0 %v1813_v31  ;;  %v1882_v31 = vld [vmem:[#allocation3 + $0x3b0] ss:$12 sps:$4 sm:$0xff]  }
  0x6f   :  { %1602 = vmatpush3.bf16.msra.mxu1 %v1815_v34 }
  0x70   :  { %1161 = vmatpush1.bf16.msra.mxu0 %v1811_v33  ;;  %1603 = vmatprep.subr.bf16.mxu1 %v1819_v36 }
  0x71   :  { %1162 = vmatprep.subr.bf16.mxu0 %v1818_v35 }
  0x73   :  { %1604 = vmatpush3.bf16.msra.mxu1 %v1820_v38 }
  0x74   :  { %1163 = vmatpush1.bf16.msra.mxu0 %v1816_v37  ;;  %1611 = vmatprep.subr.bf16.mxu1 %v1824_v40 }
  0x75   :  { %1164 = vmatprep.subr.bf16.mxu0 %v1823_v39 }
  0x76   :  { %1263 = vmatmul.mubr.bf16.vlgmr.msra.gmra.mrb[4].mxu1 %v1971_v7  ;;  %v1856_v7 = vld [vmem:[#allocation3 + $0x468] ss:$12 sps:$4 sm:$0xff]  }
  0x77   :  { %1612 = vmatpush3.bf16.msra.mxu1 %v1825_v42  ;;  %1302 = vmatprep.mubr.bf16.mxu1 %v1967_v53  ;;  %v1848_v53 = vld [vmem:[#allocation3 + $0x43c] ss:$12 sps:$4 sm:$0xff]  }
  0x78   :  { %1165 = vmatpush1.bf16.msra.mxu0 %v1821_v41  ;;  %1613 = vmatprep.subr.bf16.mxu1 %v1829_v45  ;;  %v239_v41 = vlaneseq }
  0x79   :  { %1166 = vmatprep.subr.bf16.mxu0 %v1828_v43 }
  0x7a   :  { %v240_v42 = vshrl.u32 %v239_v41, 7 }
  0x7b   :  { %1614 = vmatpush3.bf16.msra.mxu1 %v1830_v48 }
  0x7c   :  { %1167 = vmatpush1.bf16.msra.mxu0 %v1826_v47  ;;  %1615 = vmatprep.subr.bf16.mxu1 %v1834_v50  ;;  %v249_v43 = vsub.s32 2, %v240_v42 }
  0x7d   :  { %1168 = vmatprep.subr.bf16.mxu0 %v1833_v49 }
  0x7e   :  { %v250_v45 = vrot.slane %v237_v44, %v249_v43 }
  0x7f   :  { %1616 = vmatpush3.bf16.msra.mxu1 %v1835_v52 }
  0x80   :  { %1169 = vmatpush1.bf16.msra.mxu0 %v1831_v51  ;;  %1617 = vmatprep.subr.bf16.mxu1 %v1839_v55  ;;  %v241_v51 = vsub.s32 0, %v240_v42 }
  0x81   :  { %1170 = vmatprep.subr.bf16.mxu0 %v1838_v54  ;;  %v245_v54 = vsub.s32 1, %v240_v42 }
  0x83   :  { %1618 = vmatpush3.bf16.msra.mxu1 %v1840_v57  ;;  %v246_v57 = vrot.slane %v237_v44, %v245_v54 }
  0x84   :  { %1171 = vmatpush1.bf16.msra.mxu0 %v1836_v56  ;;  %1619 = vmatprep.subr.bf16.mxu1 %v1844_v59  ;;  %v242_v56 = vrot.slane %v237_v44, %v241_v51 }
  0x85   :  { %1172 = vmatprep.subr.bf16.mxu0 %v1843_v58  ;;  %v1393_v58 = vld [vmem:[%s2011_s3] sm:$0x7] }
  0x87   :  { %1620 = vmatpush3.bf16.msra.mxu1 %v1845_v61 }
  0x88   :  { %1173 = vmatpush1.bf16.msra.mxu0 %v1841_v60  ;;  %1621 = vmatprep.subr.bf16.mxu1 %v1849_v62  ;;  %v1398_v62 = vrot.slane %v1393_v58, %v241_v51 }
  0x89   :  { %1174 = vmatprep.subr.bf16.mxu0 %v1848_v53 }
  0x8b   :  { %1622 = vmatpush3.bf16.msra.mxu1 %v1850_v0 }
  0x8c   :  { %1175 = vmatpush1.bf16.msra.mxu0 %v1846_v63  ;;  %1623 = vmatprep.subr.bf16.mxu1 %v1854_v2 }
  0x8d   :  { %1176 = vmatprep.subr.bf16.mxu0 %v1853_v1  ;;  %v1402_v1 = vrot.slane %v1393_v58, %v245_v54 }
  0x8f   :  { %1624 = vmatpush3.bf16.msra.mxu1 %v1855_v4 }
  0x90   :  { %1177 = vmatpush1.bf16.msra.mxu0 %v1851_v3  ;;  %1625 = vmatprep.subr.bf16.mxu1 %v1859_v6 }
  0x91   :  { %1178 = vmatprep.subr.bf16.mxu0 %v1858_v5 }
  0x93   :  { %1626 = vmatpush3.bf16.msra.mxu1 %v1860_v9 }
  0x94   :  { %1179 = vmatpush1.bf16.msra.mxu0 %v1856_v7  ;;  %1633 = vmatprep.subr.bf16.mxu1 %v1863_v10 }
  0x95   :  { %1189 = vmatprep.subr.bf16.mxu0 %v1869_v11 }
  0x96   :  { %1303 = vmatmul.mubr.bf16.vlgmr.msra.gmra.mrb[8].mxu1 %v1973_v8  ;;  %v1874_v8 = vld [vmem:[#allocation3 + $0x350] ss:$12 sps:$4 sm:$0xff]  }
  0x97   :  { %1181 = vmatmul.mubr.bf16.vlgmr.msra.gmra.mrb[0].mxu0 %v1436_v12  ;;  %1634 = vmatpush3.bf16.msra.mxu1 %v1864_v13 }
  0x98   :  { %1190 = vmatpush1.bf16.msra.mxu0 %v1867_v14  ;;  %1635 = vmatprep.subr.bf16.mxu1 %v1865_v15 }
  0x99   :  { %1221 = vmatprep.mubr.bf16.mxu0 %v1911_v18  ;;  %1657 = vmatprep.subr.bf16.mxu0 %v1912_v19 }
  0x9a   :  { %1342 = vmatprep.mubr.bf16.mxu1 %v1985_v46 }
  0x9b   :  { %1636 = vmatpush3.bf16.msra.mxu1 %v1866_v16 }
  0x9c   :  { %1637 = vmatprep.subr.bf16.mxu1 %v1870_v17 }
  0x9f   :  { %1638 = vmatpush3.bf16.msra.mxu1 %v1871_v20 }
  0xa0   :  { %1639 = vmatprep.subr.bf16.mxu1 %v1873_v21  ;;  %v1406_v21 = vrot.slane %v1393_v58, %v249_v43 }
  0xa3   :  { %1586 = vmatmul.mubr.msk.bf16.vlgmr.msra.gmra.mrb[0].mxu0 %vm1062_vm0, %v1872_v22  ;;  %1640 = vmatpush3.bf16.msra.mxu1 %v1874_v8 }
  0xa4   :  { %1658 = vmatpush3.bf16.msra.mxu0 %v1883_v23  ;;  %1641 = vmatprep.subr.bf16.mxu1 %v1875_v24  ;;  %v1588_v24 = vld [vmem:[#allocation2] ss:$0 sm:$0xff] }
  0xa5   :  { %1659 = vmatprep.mubr.msk.bf16.mxu0 %vm1913_vm1, %v1912_v19 }
  0xa7   :  { %1642 = vmatpush3.bf16.msra.mxu1 %v1876_v25 }
  0xa8   :  { %1643 = vmatprep.subr.bf16.mxu1 %v1877_v26 }
  0xab   :  { %1660 = vmatmul.mubr.msk.bf16.vlgmr.msra.gmra.mrb[4].mxu0 %vm1062_vm0, %v1872_v22  ;;  %1644 = vmatpush3.bf16.msra.mxu1 %v1878_v27 }
  0xac   :  { %1645 = vmatprep.subr.bf16.mxu1 %v1879_v28 }
  0xaf   :  { %1646 = vmatpush3.bf16.msra.mxu1 %v1880_v29 }
  0xb0   :  { %1647 = vmatprep.subr.bf16.mxu1 %v1881_v30 }
  0xb3   :  { %1648 = vmatpush3.bf16.msra.mxu1 %v1882_v31 }
  0xb6   :  { %1343 = vmatmul.mubr.bf16.vlgmr.msra.gmra.mrb[12].mxu1 %v1436_v12 }
 0x129   :  { %v1100_v32 = vpop.f32.mrb[0].mxu1 }
 0x12a   :  { %v1102_v33 = vpop.f32.mrb[1].mxu1  ;;  %v1101_v59 = vadd.f32 %v1100_v32, %v242_v56 }
 0x12b   :  { %v1104_v34 = vpop.f32.mrb[2].mxu1  ;;  %v1103_v60 = vadd.f32 %v1102_v33, %v246_v57 }
 0x12c   :  { %v1105_v35 = vpop.f32.mrb[3].mxu1 }
 0x149   :  { %v1605_v36 = vpop.f32.mrb[4].mxu1 }
 0x14a   :  { %v1606_v37 = vpop.f32.mrb[5].mxu1 }
 0x14b   :  { %v1607_v38 = vadd.f32 %v1606_v37, %v1605_v36  ;;  %v1608_v39 = vpop.f32.mrb[6].mxu1 }
 0x14c   :  { %v1609_v40 = vpop.f32.mrb[7].mxu1 }
 0x14d   :  { %v1265_v48 = vadd.f32 %v1607_v38, %v250_v45 }
 0x169   :  { %v1627_v46 = vpop.f32.mrb[8].mxu1 }
 0x16a   :  { %v1628_v47 = vpop.f32.mrb[9].mxu1 }
 0x16b   :  { %v1629_v49 = vadd.f32 %v1628_v47, %v1627_v46  ;;  %v1630_v50 = vpop.f32.mrb[10].mxu1 }
 0x16c   :  { %v1631_v52 = vpop.f32.mrb[11].mxu1 }
 0x16d   :  { %v1305_v55 = vadd.f32 %v1629_v49, %v1265_v48 }
 0x176   :  { %v1223_v61 = vpop.f32.mrb[0].mxu0 }
 0x177   :  { %v1664_v53 = vadd.f32 %v1223_v61, %v1101_v59  ;;  %v1225_v63 = vpop.f32.mrb[1].mxu0 }
 0x178   :  { %v1666_v0 = vadd.f32 %v1225_v63, %v1103_v60  ;;  %v1227_v2 = vpop.f32.mrb[2].mxu0 }
 0x179   :  { %v1390_v3 = vmax.f32 %v1664_v53, 0.0  ;;  %v1228_v4 = vpop.f32.mrb[3].mxu0 }
 0x17a   :  { %v1391_v5 = vmax.f32 %v1666_v0, 0.0 }
 0x17b   :  { %v1410_v6 = vmul.f32 %v1398_v62, %v1390_v3 }
 0x17c   :  { %v1411_v7 = vmul.f32 %v1402_v1, %v1391_v5 }
 0x17e   :  { %v1384_v9 = vpop.f32.mrb[4].mxu0  ;;  %v1413_v10 = vadd.f32 %v1411_v7, %v1410_v6 }
 0x17f   :  { %v1661_v11 = vpop.f32.mrb[5].mxu0 }
 0x180   :  { %v1387_v12 = vpop.f32.mrb[6].mxu0 }
 0x181   :  { %v1662_v13 = vpop.f32.mrb[7].mxu0 }
 0x189   :  { %v1649_v14 = vpop.f32.mrb[12].mxu1 }
 0x18a   :  { %v1650_v15 = vpop.f32.mrb[13].mxu1 }
 0x18b   :  { %v1651_v16 = vadd.f32 %v1650_v15, %v1649_v14  ;;  %v1652_v17 = vpop.f32.mrb[14].mxu1 }
 0x18c   :  { %v1653_v18 = vpop.f32.mrb[15].mxu1 }
 0x18d   :  { %v1345_v19 = vadd.f32 %v1651_v16, %v1305_v55 }
 0x18f   :  { %v1385_v20 = vadd.f32 %v1384_v9, %v1345_v19 }
 0x191   :  { %v1392_v22 = vmax.f32 %v1385_v20, 0.0 }
 0x193   :  { %v1412_v8 = vmul.f32 %v1406_v21, %v1392_v22 }
 0x195   :  { %v1414_v23 = vadd.f32 %v1413_v10, %v1412_v8 }
 0x197   :  { %1415 = vadd.xlane.f32.xlu0 %v1414_v23 }
 0x224   :  { %v1416_v25 = vpop.xlane.xlu0 %1415 }
 0x225   :  { %v1424_v26 = vadd.f32 %v1588_v24, %v1416_v25 }
 0x227   :  { %1426 = vst.msk [vmem:[%s2013_s5] sm:$0xff] %vm1425_vm2, %v1424_v26 }
 0x228   :  { %1431 = vsyncpa [#allocation4], 1 }

</bundles_post_ra>
